<compile_context>
chip_gen: v5e
topology: v5e:2x2
jax: 0.10.0
libtpu: 0.0.40
codegen_flags: <defaults>
</compile_context>

<pallas_src>
import functools

import numpy as np

import jax
import jax.numpy as jnp
from jax import lax
from jax.experimental import pallas as pl
from jax.experimental.pallas import tpu as pltpu


def _round_up(x, m):
    return (x + m - 1) // m * m


def rnn_predictor_kernel(x_ref, wih_ref, whh_ref, b_ref, wout_ref, bout_ref,
                         pred_ref, hid_ref, h_ref, z_ref, *, t_total):
    """One (batch block, time chunk) grid step of the tanh-RNN + final linear.

    x_ref   : (tc, Bb, D)    time-major input chunk
    wih_ref : (D, Hp)        W_ih^T, H zero-padded to lanes
    whh_ref : (Hp, Hp)       W_hh^T
    b_ref   : (1, Hp)        b_ih + b_hh (folded)
    wout_ref: (Hp, Op)       W_out^T
    bout_ref: (1, Op)        b_out
    pred_ref: (Bb, Op)       prediction    (written on last time chunk only)
    hid_ref : (Bb, Hp)       final hidden  (written on last time chunk only)
    h_ref   : (Bb, Hp)       VMEM scratch carrying h across time chunks
    z_ref   : (tc, Bb, Hp)   VMEM scratch, time-major input projection
    """
    c = pl.program_id(1)                 # time-chunk index
    nc = pl.num_programs(1)
    tc, bb, d = x_ref.shape
    hp = whh_ref.shape[0]

    @pl.when(c == 0)
    def _():
        h_ref[...] = jnp.zeros_like(h_ref)

    # ---- Phase 1: whole-chunk input projection as one MXU matmul. ----------
    # (tc, Bb, D) -> (tc*Bb, D) is a tile-granular (free) merge since Bb % 8 == 0.
    x_flat = x_ref[...].reshape(tc * bb, d)
    z = jnp.dot(x_flat, wih_ref[...], preferred_element_type=jnp.float32)
    z_ref[...] = (z + b_ref[...]).reshape(tc, bb, hp)

    # ---- Phase 2: serial recurrence; z_ref[t] is a dense aligned (Bb, Hp) tile. ----
    whh = whh_ref[...]

    def step(t, h):
        return jnp.tanh(z_ref[t] +
                        jnp.dot(h, whh, preferred_element_type=jnp.float32))

    def run(n_steps, h0):
        if n_steps <= 0:
            return h0
        unroll = next((u for u in (8, 4, 2) if n_steps % u == 0), 1)
        return lax.fori_loop(0, n_steps, step, h0, unroll=unroll)

    nc_static = -(-t_total // tc)
    rem = t_total - (nc_static - 1) * tc          # static, 1 <= rem <= tc

    if rem == tc:
        # Every chunk is full: one static-trip loop, no masks at all.
        h_ref[...] = run(tc, h_ref[...])
    else:
        @pl.when(c < nc - 1)
        def _():
            h_ref[...] = run(tc, h_ref[...])

        @pl.when(c == nc - 1)
        def _():
            # Ragged tail: exactly `rem` steps, no wasted serial matmul+tanh.
            h_ref[...] = run(rem, h_ref[...])

    # ---- Finalize: hidden state + last-step linear on the last chunk. ------
    @pl.when(c == nc - 1)
    def _():
        h = h_ref[...]
        hid_ref[...] = h.astype(hid_ref.dtype)
        pred = (jnp.dot(h, wout_ref[...], preferred_element_type=jnp.float32)
                + bout_ref[...])
        pred_ref[...] = pred.astype(pred_ref.dtype)


def rnn_predictor_forward(x, params, *, t_chunk=256, batch_blocks=1,
                          input_proj_dtype=jnp.float32,
                          vmem_budget_bytes=24 * (1 << 20)):
    """x: (B, T, D_in) float32, batch_first like the PyTorch module.

    Returns (pred, hidden): pred (B, O), hidden (1, B, H).
    batch_blocks > 1 adds a leading 'parallel' grid axis (useful on v7x, B >= 16).
    """
    B, T, D = x.shape
    H = params["w_hh"].shape[0]
    O = params["w_out"].shape[0]

    # Pad batch to sublanes (8 * batch_blocks so it tiles evenly), H/O to lanes (128).
    Bp = _round_up(B, 8 * batch_blocks)
    b_blk = Bp // batch_blocks
    Hp = _round_up(H, 128)
    Op = _round_up(O, 128)

    # Time chunking: bigger chunks amortize per-grid-step overhead; clamp so the
    # (tc, b_blk, Hp) z scratch + double-buffered x chunk fit the VMEM budget.
    x_itemsize = np.dtype(input_proj_dtype).itemsize

    def chunk_vmem(tc_):
        return 4 * tc_ * b_blk * Hp + 2 * x_itemsize * tc_ * b_blk * D

    tc = min(_round_up(t_chunk, 8), _round_up(T, 8))
    while tc > 8 and chunk_vmem(tc) > vmem_budget_bytes:
        tc = max(8, (tc // 2) - (tc // 2) % 8)
    if T <= tc:
        tc = T
    nc = -(-T // tc)
    Tp = nc * tc

    # Parameter / layout prep.  x goes time-major so each recurrence step reads a
    # contiguous (Bb, Hp) tile; this single wrapper transpose is amortized over T.
    x_tm = jnp.transpose(x, (1, 0, 2)).astype(input_proj_dtype)        # (T, B, D)
    x_p = jnp.pad(x_tm, ((0, Tp - T), (0, Bp - B), (0, 0)))
    wih_t = jnp.pad(params["w_ih"].T, ((0, 0), (0, Hp - H))).astype(input_proj_dtype)
    whh_t = jnp.pad(params["w_hh"].T,
                    ((0, Hp - H), (0, Hp - H))).astype(jnp.float32)     # (Hp, Hp)
    b = jnp.pad(params["b_ih"] + params["b_hh"],
                (0, Hp - H))[None].astype(jnp.float32)                  # (1, Hp)
    wout_t = jnp.pad(params["w_out"].T,
                     ((0, Hp - H), (0, Op - O))).astype(jnp.float32)    # (Hp, Op)
    bout = jnp.pad(params["b_out"], (0, Op - O))[None].astype(jnp.float32)

    kernel = functools.partial(rnn_predictor_kernel, t_total=T)

    weights_bytes = 4 * (D * Hp + Hp * Hp + Hp + Hp * Op + Op)
    vmem_needed = (chunk_vmem(tc) + weights_bytes
                   + 4 * (b_blk * Hp + b_blk * Op + b_blk * Hp))
    vmem_limit = int(min(64 * (1 << 20), max(2 * vmem_needed, 16 * (1 << 20))))

    flops = int(2 * Bp * Tp * (D * Hp + Hp * Hp) + 2 * Bp * Hp * Op)
    bytes_accessed = int(x_p.size * x_itemsize + weights_bytes
                         + 4 * (Bp * Op + Bp * Hp))

    pred_p, hid_p = pl.pallas_call(
        kernel,
        out_shape=(jax.ShapeDtypeStruct((Bp, Op), jnp.float32),
                   jax.ShapeDtypeStruct((Bp, Hp), jnp.float32)),
        grid_spec=pltpu.PrefetchScalarGridSpec(
            num_scalar_prefetch=0,
            grid=(batch_blocks, nc),
            in_specs=[
                pl.BlockSpec((tc, b_blk, D), lambda bi, ci: (ci, bi, 0)),  # x chunk
                pl.BlockSpec((D, Hp), lambda bi, ci: (0, 0)),     # W_ih^T (resident)
                pl.BlockSpec((Hp, Hp), lambda bi, ci: (0, 0)),    # W_hh^T (resident)
                pl.BlockSpec((1, Hp), lambda bi, ci: (0, 0)),     # b_ih + b_hh
                pl.BlockSpec((Hp, Op), lambda bi, ci: (0, 0)),    # W_out^T
                pl.BlockSpec((1, Op), lambda bi, ci: (0, 0)),     # b_out
            ],
            out_specs=(pl.BlockSpec((b_blk, Op), lambda bi, ci: (bi, 0)),
                       pl.BlockSpec((b_blk, Hp), lambda bi, ci: (bi, 0))),
            scratch_shapes=[pltpu.VMEM((b_blk, Hp), jnp.float32),        # carried h
                            pltpu.VMEM((tc, b_blk, Hp), jnp.float32)],   # time-major z
        ),
        compiler_params=pltpu.CompilerParams(
            dimension_semantics=("parallel", "arbitrary"),   # batch parallel, T serial
            vmem_limit_bytes=vmem_limit),
        cost_estimate=pl.CostEstimate(
            flops=flops,
            transcendentals=int(Bp * Tp * Hp),
            bytes_accessed=bytes_accessed),
    )(x_p, wih_t, whh_t, b, wout_t, bout)

    pred = pred_p[:B, :O]
    hidden = hid_p[:B, :H][None]   # (num_layers=1, B, H), PyTorch hidden convention
    return pred, hidden


def init_params(key, input_size, hidden_size, output_size):
    """Deterministic init mimicking PyTorch uniform(-1/sqrt(H), 1/sqrt(H))."""
    ks = jax.random.split(key, 6)
    bound = 1.0 / jnp.sqrt(hidden_size)

    def u(k, shape):
        return jax.random.uniform(k, shape, jnp.float32, -bound, bound)

    return {
        "w_ih": u(ks[0], (hidden_size, input_size)),
        "w_hh": u(ks[1], (hidden_size, hidden_size)),
        "b_ih": u(ks[2], (hidden_size,)),
        "b_hh": u(ks[3], (hidden_size,)),
        "w_out": u(ks[4], (output_size, hidden_size)),
        "b_out": u(ks[5], (output_size,)),
    }


def reference_forward(x, params):
    """Pure-JAX reference matching torch.nn.RNN(tanh, batch_first) + Linear."""
    B, T, D = x.shape
    H = params["w_hh"].shape[0]
    h = jnp.zeros((B, H), jnp.float32)
    for t in range(T):
        h = jnp.tanh(x[:, t, :] @ params["w_ih"].T + params["b_ih"]
                     + h @ params["w_hh"].T + params["b_hh"])
    pred = h @ params["w_out"].T + params["b_out"]
    return pred, h[None]


if __name__ == "__main__":
    key = jax.random.PRNGKey(0)
    k_x, k_p, k_x2 = jax.random.split(key, 3)

    # Test 1: module-default small shapes, single time chunk.
    B, T, D_in, H, O = 2, 8, 16, 32, 8
    x = jax.random.normal(k_x, (B, T, D_in), jnp.float32)
    params = init_params(k_p, D_in, H, O)

    pred, hidden = rnn_predictor_forward(x, params)
    jax.block_until_ready((pred, hidden))

    pred_ref, hidden_ref = reference_forward(x, params)
    assert pred.shape == (B, O) and hidden.shape == (1, B, H)
    assert jnp.allclose(pred, pred_ref, atol=1e-4, rtol=1e-4)
    assert jnp.allclose(hidden, hidden_ref, atol=1e-4, rtol=1e-4)

    # Test 2: multi-chunk time grid with a ragged tail (exercises the carried h
    # scratch and the static-rem tail branch).
    T2 = 20
    x2 = jax.random.normal(k_x2, (B, T2, D_in), jnp.float32)
    pred2, hidden2 = rnn_predictor_forward(x2, params, t_chunk=8)
    jax.block_until_ready((pred2, hidden2))

    pred2_ref, hidden2_ref = reference_forward(x2, params)
    assert jnp.allclose(pred2, pred2_ref, atol=1e-4, rtol=1e-4)
    assert jnp.allclose(hidden2, hidden2_ref, atol=1e-4, rtol=1e-4)

    # Test 3: batch-parallel grid axis (v7x path); correctness on any chip.
    pred3, hidden3 = rnn_predictor_forward(x2, params, t_chunk=8, batch_blocks=2)
    jax.block_until_ready((pred3, hidden3))
    assert jnp.allclose(pred3, pred2_ref, atol=1e-4, rtol=1e-4)
    assert jnp.allclose(hidden3, hidden2_ref, atol=1e-4, rtol=1e-4)

    print("KERNEL_OK")
</pallas_src>

<mosaic_0001>
module attributes {stable_mosaic.version = 11 : i64} {
  func.func @rnn_predictor_kernel(%arg0: i32, %arg1: i32, %arg2: memref<8x8x16xf32, #tpu.memory_space<vmem>>, %arg3: memref<16x128xf32, #tpu.memory_space<vmem>>, %arg4: memref<128x128xf32, #tpu.memory_space<vmem>>, %arg5: memref<1x128xf32, #tpu.memory_space<vmem>>, %arg6: memref<128x128xf32, #tpu.memory_space<vmem>>, %arg7: memref<1x128xf32, #tpu.memory_space<vmem>>, %arg8: memref<8x128xf32, #tpu.memory_space<vmem>>, %arg9: memref<8x128xf32, #tpu.memory_space<vmem>>, %arg10: memref<8x128xf32, #tpu.memory_space<vmem>>, %arg11: memref<8x8x128xf32, #tpu.memory_space<vmem>>) attributes {dimension_semantics = [#tpu.dimension_semantics<parallel>, #tpu.dimension_semantics<arbitrary>], iteration_bounds = array<i64: 1, 1>, scalar_prefetch = 0 : i64, scratch_operands = 2 : i64, tpu.core_type = #tpu.core_type<tc>, window_params = [{transform_indices = @transform_0, window_bounds = array<i64: 8, 8, 16>}, {pipeline_mode = #tpu.pipeline_mode<synchronous>, transform_indices = @transform_1, window_bounds = array<i64: 16, 128>}, {pipeline_mode = #tpu.pipeline_mode<synchronous>, transform_indices = @transform_2, window_bounds = array<i64: 128, 128>}, {pipeline_mode = #tpu.pipeline_mode<synchronous>, transform_indices = @transform_3, window_bounds = array<i64: 1, 128>}, {pipeline_mode = #tpu.pipeline_mode<synchronous>, transform_indices = @transform_4, window_bounds = array<i64: 128, 128>}, {pipeline_mode = #tpu.pipeline_mode<synchronous>, transform_indices = @transform_5, window_bounds = array<i64: 1, 128>}, {transform_indices = @transform_6, window_bounds = array<i64: 8, 128>}, {transform_indices = @transform_7, window_bounds = array<i64: 8, 128>}]} {
    %c0_i32 = arith.constant 0 : i32
    %0 = arith.cmpi eq, %arg1, %c0_i32 : i32
    %1 = arith.extui %0 : i1 to i32
    %c0_i32_0 = arith.constant 0 : i32
    %2 = arith.cmpi ne, %1, %c0_i32_0 : i32
    scf.if %2 {
      %cst_43 = arith.constant 0.000000e+00 : f32
      %66 = vector.broadcast %cst_43 : f32 to vector<8x128xf32>
      %c0_44 = arith.constant 0 : index
      %c0_45 = arith.constant 0 : index
      %67 = vector.load %arg10[%c0_44, %c0_45] : memref<8x128xf32, #tpu.memory_space<vmem>>, vector<8x128xf32>
      tpu.vector_store %arg10[%c0_44, %c0_45], %66 {strides = array<i32>} : memref<8x128xf32, #tpu.memory_space<vmem>>, vector<8x128xf32>,
    } else {
    }
    %c0 = arith.constant 0 : index
    %c0_1 = arith.constant 0 : index
    %c0_2 = arith.constant 0 : index
    %3 = vector.load %arg2[%c0, %c0_1, %c0_2] : memref<8x8x16xf32, #tpu.memory_space<vmem>>, vector<8x8x16xf32>
    %4 = vector.shape_cast %3 : vector<8x8x16xf32> to vector<64x16xf32>
    %c0_3 = arith.constant 0 : index
    %c0_4 = arith.constant 0 : index
    %5 = vector.load %arg3[%c0_3, %c0_4] : memref<16x128xf32, #tpu.memory_space<vmem>>, vector<16x128xf32>
    %cst = arith.constant dense<0.000000e+00> : vector<64x128xf32>
    %6 = tpu.matmul %4, %5, %cst {dimension_numbers = #tpu.dot_dimension_numbers<[1], [0], [0], [1], [0, 0, 1, 1], [], []>} : vector<64x16xf32>, vector<16x128xf32>, vector<64x128xf32> -> vector<64x128xf32>
    %c0_5 = arith.constant 0 : index
    %c0_6 = arith.constant 0 : index
    %7 = vector.load %arg5[%c0_5, %c0_6] : memref<1x128xf32, #tpu.memory_space<vmem>>, vector<1x128xf32>
    %8 = vector.broadcast %7 : vector<1x128xf32> to vector<64x128xf32>
    %9 = arith.addf %6, %8 : vector<64x128xf32>
    %10 = vector.shape_cast %9 : vector<64x128xf32> to vector<8x8x128xf32>
    %c0_7 = arith.constant 0 : index
    %c0_8 = arith.constant 0 : index
    %c0_9 = arith.constant 0 : index
    %11 = vector.load %arg11[%c0_7, %c0_8, %c0_9] : memref<8x8x128xf32, #tpu.memory_space<vmem>>, vector<8x8x128xf32>
    tpu.vector_store %arg11[%c0_7, %c0_8, %c0_9], %10 {strides = array<i32>} : memref<8x8x128xf32, #tpu.memory_space<vmem>>, vector<8x8x128xf32>,
    %c0_10 = arith.constant 0 : index
    %c0_11 = arith.constant 0 : index
    %12 = vector.load %arg4[%c0_10, %c0_11] : memref<128x128xf32, #tpu.memory_space<vmem>>, vector<128x128xf32>
    %c0_12 = arith.constant 0 : index
    %c0_13 = arith.constant 0 : index
    %13 = vector.load %arg10[%c0_12, %c0_13] : memref<8x128xf32, #tpu.memory_space<vmem>>, vector<8x128xf32>
    %c0_i32_14 = arith.constant 0 : i32
    %14 = arith.index_cast %c0_i32_14 : i32 to index
    %c0_15 = arith.constant 0 : index
    %c0_16 = arith.constant 0 : index
    %15 = vector.load %arg11[%14, %c0_15, %c0_16] : memref<8x8x128xf32, #tpu.memory_space<vmem>>, vector<1x8x128xf32>
    %16 = vector.shape_cast %15 : vector<1x8x128xf32> to vector<8x128xf32>
    %cst_17 = arith.constant dense<0.000000e+00> : vector<8x128xf32>
    %17 = tpu.matmul %13, %12, %cst_17 {dimension_numbers = #tpu.dot_dimension_numbers<[1], [0], [0], [1], [0, 0, 1, 1], [], []>} : vector<8x128xf32>, vector<128x128xf32>, vector<8x128xf32> -> vector<8x128xf32>
    %18 = arith.addf %16, %17 : vector<8x128xf32>
    %19 = math.tanh %18 : vector<8x128xf32>
    %c1_i32 = arith.constant 1 : i32
    %20 = arith.index_cast %c1_i32 : i32 to index
    %c0_18 = arith.constant 0 : index
    %c0_19 = arith.constant 0 : index
    %21 = vector.load %arg11[%20, %c0_18, %c0_19] : memref<8x8x128xf32, #tpu.memory_space<vmem>>, vector<1x8x128xf32>
    %22 = vector.shape_cast %21 : vector<1x8x128xf32> to vector<8x128xf32>
    %cst_20 = arith.constant dense<0.000000e+00> : vector<8x128xf32>
    %23 = tpu.matmul %19, %12, %cst_20 {dimension_numbers = #tpu.dot_dimension_numbers<[1], [0], [0], [1], [0, 0, 1, 1], [], []>} : vector<8x128xf32>, vector<128x128xf32>, vector<8x128xf32> -> vector<8x128xf32>
    %24 = arith.addf %22, %23 : vector<8x128xf32>
    %25 = math.tanh %24 : vector<8x128xf32>
    %c2_i32 = arith.constant 2 : i32
    %26 = arith.index_cast %c2_i32 : i32 to index
    %c0_21 = arith.constant 0 : index
    %c0_22 = arith.constant 0 : index
    %27 = vector.load %arg11[%26, %c0_21, %c0_22] : memref<8x8x128xf32, #tpu.memory_space<vmem>>, vector<1x8x128xf32>
    %28 = vector.shape_cast %27 : vector<1x8x128xf32> to vector<8x128xf32>
    %cst_23 = arith.constant dense<0.000000e+00> : vector<8x128xf32>
    %29 = tpu.matmul %25, %12, %cst_23 {dimension_numbers = #tpu.dot_dimension_numbers<[1], [0], [0], [1], [0, 0, 1, 1], [], []>} : vector<8x128xf32>, vector<128x128xf32>, vector<8x128xf32> -> vector<8x128xf32>
    %30 = arith.addf %28, %29 : vector<8x128xf32>
    %31 = math.tanh %30 : vector<8x128xf32>
    %c3_i32 = arith.constant 3 : i32
    %32 = arith.index_cast %c3_i32 : i32 to index
    %c0_24 = arith.constant 0 : index
    %c0_25 = arith.constant 0 : index
    %33 = vector.load %arg11[%32, %c0_24, %c0_25] : memref<8x8x128xf32, #tpu.memory_space<vmem>>, vector<1x8x128xf32>
    %34 = vector.shape_cast %33 : vector<1x8x128xf32> to vector<8x128xf32>
    %cst_26 = arith.constant dense<0.000000e+00> : vector<8x128xf32>
    %35 = tpu.matmul %31, %12, %cst_26 {dimension_numbers = #tpu.dot_dimension_numbers<[1], [0], [0], [1], [0, 0, 1, 1], [], []>} : vector<8x128xf32>, vector<128x128xf32>, vector<8x128xf32> -> vector<8x128xf32>
    %36 = arith.addf %34, %35 : vector<8x128xf32>
    %37 = math.tanh %36 : vector<8x128xf32>
    %c4_i32 = arith.constant 4 : i32
    %38 = arith.index_cast %c4_i32 : i32 to index
    %c0_27 = arith.constant 0 : index
    %c0_28 = arith.constant 0 : index
    %39 = vector.load %arg11[%38, %c0_27, %c0_28] : memref<8x8x128xf32, #tpu.memory_space<vmem>>, vector<1x8x128xf32>
    %40 = vector.shape_cast %39 : vector<1x8x128xf32> to vector<8x128xf32>
    %cst_29 = arith.constant dense<0.000000e+00> : vector<8x128xf32>
    %41 = tpu.matmul %37, %12, %cst_29 {dimension_numbers = #tpu.dot_dimension_numbers<[1], [0], [0], [1], [0, 0, 1, 1], [], []>} : vector<8x128xf32>, vector<128x128xf32>, vector<8x128xf32> -> vector<8x128xf32>
    %42 = arith.addf %40, %41 : vector<8x128xf32>
    %43 = math.tanh %42 : vector<8x128xf32>
    %c5_i32 = arith.constant 5 : i32
    %44 = arith.index_cast %c5_i32 : i32 to index
    %c0_30 = arith.constant 0 : index
    %c0_31 = arith.constant 0 : index
    %45 = vector.load %arg11[%44, %c0_30, %c0_31] : memref<8x8x128xf32, #tpu.memory_space<vmem>>, vector<1x8x128xf32>
    %46 = vector.shape_cast %45 : vector<1x8x128xf32> to vector<8x128xf32>
    %cst_32 = arith.constant dense<0.000000e+00> : vector<8x128xf32>
    %47 = tpu.matmul %43, %12, %cst_32 {dimension_numbers = #tpu.dot_dimension_numbers<[1], [0], [0], [1], [0, 0, 1, 1], [], []>} : vector<8x128xf32>, vector<128x128xf32>, vector<8x128xf32> -> vector<8x128xf32>
    %48 = arith.addf %46, %47 : vector<8x128xf32>
    %49 = math.tanh %48 : vector<8x128xf32>
    %c6_i32 = arith.constant 6 : i32
    %50 = arith.index_cast %c6_i32 : i32 to index
    %c0_33 = arith.constant 0 : index
    %c0_34 = arith.constant 0 : index
    %51 = vector.load %arg11[%50, %c0_33, %c0_34] : memref<8x8x128xf32, #tpu.memory_space<vmem>>, vector<1x8x128xf32>
    %52 = vector.shape_cast %51 : vector<1x8x128xf32> to vector<8x128xf32>
    %cst_35 = arith.constant dense<0.000000e+00> : vector<8x128xf32>
    %53 = tpu.matmul %49, %12, %cst_35 {dimension_numbers = #tpu.dot_dimension_numbers<[1], [0], [0], [1], [0, 0, 1, 1], [], []>} : vector<8x128xf32>, vector<128x128xf32>, vector<8x128xf32> -> vector<8x128xf32>
    %54 = arith.addf %52, %53 : vector<8x128xf32>
    %55 = math.tanh %54 : vector<8x128xf32>
    %c7_i32 = arith.constant 7 : i32
    %56 = arith.index_cast %c7_i32 : i32 to index
    %c0_36 = arith.constant 0 : index
    %c0_37 = arith.constant 0 : index
    %57 = vector.load %arg11[%56, %c0_36, %c0_37] : memref<8x8x128xf32, #tpu.memory_space<vmem>>, vector<1x8x128xf32>
    %58 = vector.shape_cast %57 : vector<1x8x128xf32> to vector<8x128xf32>
    %cst_38 = arith.constant dense<0.000000e+00> : vector<8x128xf32>
    %59 = tpu.matmul %55, %12, %cst_38 {dimension_numbers = #tpu.dot_dimension_numbers<[1], [0], [0], [1], [0, 0, 1, 1], [], []>} : vector<8x128xf32>, vector<128x128xf32>, vector<8x128xf32> -> vector<8x128xf32>
    %60 = arith.addf %58, %59 : vector<8x128xf32>
    %61 = math.tanh %60 : vector<8x128xf32>
    %c8_i32 = arith.constant 8 : i32
    %c0_39 = arith.constant 0 : index
    %c0_40 = arith.constant 0 : index
    %62 = vector.load %arg10[%c0_39, %c0_40] : memref<8x128xf32, #tpu.memory_space<vmem>>, vector<8x128xf32>
    tpu.vector_store %arg10[%c0_39, %c0_40], %61 {strides = array<i32>} : memref<8x128xf32, #tpu.memory_space<vmem>>, vector<8x128xf32>,
    %c0_i32_41 = arith.constant 0 : i32
    %63 = arith.cmpi eq, %arg1, %c0_i32_41 : i32
    %64 = arith.extui %63 : i1 to i32
    %c0_i32_42 = arith.constant 0 : i32
    %65 = arith.cmpi ne, %64, %c0_i32_42 : i32
    scf.if %65 {
      %c0_43 = arith.constant 0 : index
      %c0_44 = arith.constant 0 : index
      %66 = vector.load %arg10[%c0_43, %c0_44] : memref<8x128xf32, #tpu.memory_space<vmem>>, vector<8x128xf32>
      %c0_45 = arith.constant 0 : index
      %c0_46 = arith.constant 0 : index
      %67 = vector.load %arg9[%c0_45, %c0_46] : memref<8x128xf32, #tpu.memory_space<vmem>>, vector<8x128xf32>
      tpu.vector_store %arg9[%c0_45, %c0_46], %66 {strides = array<i32>} : memref<8x128xf32, #tpu.memory_space<vmem>>, vector<8x128xf32>,
      %c0_47 = arith.constant 0 : index
      %c0_48 = arith.constant 0 : index
      %68 = vector.load %arg6[%c0_47, %c0_48] : memref<128x128xf32, #tpu.memory_space<vmem>>, vector<128x128xf32>
      %cst_49 = arith.constant dense<0.000000e+00> : vector<8x128xf32>
      %69 = tpu.matmul %66, %68, %cst_49 {dimension_numbers = #tpu.dot_dimension_numbers<[1], [0], [0], [1], [0, 0, 1, 1], [], []>} : vector<8x128xf32>, vector<128x128xf32>, vector<8x128xf32> -> vector<8x128xf32>
      %c0_50 = arith.constant 0 : index
      %c0_51 = arith.constant 0 : index
      %70 = vector.load %arg7[%c0_50, %c0_51] : memref<1x128xf32, #tpu.memory_space<vmem>>, vector<1x128xf32>
      %71 = vector.broadcast %70 : vector<1x128xf32> to vector<8x128xf32>
      %72 = arith.addf %69, %71 : vector<8x128xf32>
      %c0_52 = arith.constant 0 : index
      %c0_53 = arith.constant 0 : index
      %73 = vector.load %arg8[%c0_52, %c0_53] : memref<8x128xf32, #tpu.memory_space<vmem>>, vector<8x128xf32>
      tpu.vector_store %arg8[%c0_52, %c0_53], %72 {strides = array<i32>} : memref<8x128xf32, #tpu.memory_space<vmem>>, vector<8x128xf32>,
    } else {
    }
    return
  }
  func.func @transform_0(%arg0: i32, %arg1: i32) -> (i32, i32, i32) {
    %c0_i32 = arith.constant 0 : i32
    %c0_i32_0 = arith.constant 0 : i32
    return %arg1, %arg0, %c0_i32 : i32, i32, i32
  }
  func.func @transform_1(%arg0: i32, %arg1: i32) -> (i32, i32) {
    %c0_i32 = arith.constant 0 : i32
    %c0_i32_0 = arith.constant 0 : i32
    %c0_i32_1 = arith.constant 0 : i32
    return %c0_i32, %c0_i32_0 : i32, i32
  }
  func.func @transform_2(%arg0: i32, %arg1: i32) -> (i32, i32) {
    %c0_i32 = arith.constant 0 : i32
    %c0_i32_0 = arith.constant 0 : i32
    %c0_i32_1 = arith.constant 0 : i32
    return %c0_i32, %c0_i32_0 : i32, i32
  }
  func.func @transform_3(%arg0: i32, %arg1: i32) -> (i32, i32) {
    %c0_i32 = arith.constant 0 : i32
    %c0_i32_0 = arith.constant 0 : i32
    %c0_i32_1 = arith.constant 0 : i32
    return %c0_i32, %c0_i32_0 : i32, i32
  }
  func.func @transform_4(%arg0: i32, %arg1: i32) -> (i32, i32) {
    %c0_i32 = arith.constant 0 : i32
    %c0_i32_0 = arith.constant 0 : i32
    %c0_i32_1 = arith.constant 0 : i32
    return %c0_i32, %c0_i32_0 : i32, i32
  }
  func.func @transform_5(%arg0: i32, %arg1: i32) -> (i32, i32) {
    %c0_i32 = arith.constant 0 : i32
    %c0_i32_0 = arith.constant 0 : i32
    %c0_i32_1 = arith.constant 0 : i32
    return %c0_i32, %c0_i32_0 : i32, i32
  }
  func.func @transform_6(%arg0: i32, %arg1: i32) -> (i32, i32) {
    %c0_i32 = arith.constant 0 : i32
    %c0_i32_0 = arith.constant 0 : i32
    return %arg0, %c0_i32 : i32, i32
  }
  func.func @transform_7(%arg0: i32, %arg1: i32) -> (i32, i32) {
    %c0_i32 = arith.constant 0 : i32
    %c0_i32_0 = arith.constant 0 : i32
    return %arg0, %c0_i32 : i32, i32
  }
}

</mosaic_0001>

<bundles_post_ra>
// kernel: tpu_custom_call.1
= control target key start
LH: loop header
LB: loop body
LE: loop exit
PB: predicated region body
PF: predicated region fallthrough
CT: control target
= control target key end

     0   :  { %13 = vsyncpa [#allocation5], 0  ;;  %s913_s0 = inlined_call_operand.hbm [shape: f32[8,8,16], index: 0, kind: input, shape index: {}]   ;;  %s914_s1 = inlined_call_operand.hbm [shape: f32[16,128], index: 1, kind: input, shape index: {}]   ;;  %s915_s2 = inlined_call_operand.hbm [shape: f32[128,128], index: 2, kind: input, shape index: {}]   ;;  %s916_s3 = inlined_call_operand.vmem [shape: f32[1,128], index: 3, kind: input, shape index: {}]   ;;  %s917_s4 = inlined_call_operand.hbm [shape: f32[128,128], index: 4, kind: input, shape index: {}]   ;;  %s918_s5 = inlined_call_operand.vmem [shape: f32[1,128], index: 5, kind: input, shape index: {}]   ;;  %s919_s6 = inlined_call_operand.hbm [shape: f32[8,128], index: 6, kind: output, shape index: {0}]   ;;  %s920_s7 = inlined_call_operand.hbm [shape: f32[8,128], index: 7, kind: output, shape index: {1}]  }
   0x1   :  { %14 = vsyncpa [#allocation8], 0 }
   0x2   :  { %15 = vsyncpa [#allocation11], 0 }
   0x3   :  { %16 = vsyncpa [#allocation6], 0 }
   0x4   :  { %17 = vsyncpa [#allocation14], 0  ;;  %s35_s26 = sshll.u32 %s914_s1, 4  ;;  %s662_s27 = smov [#allocation7]   ;;  %s36_s26 = int_to_ptr.hbm [resolvable:$true] %s35_s26 }
   0x5   :  { %s37_s28 = sshll.u32 %s662_s27, 4  ;;  %s22_s8 = sshll.u32 %s913_s0, 4  ;;  %s38_s28 = int_to_ptr.vmem [resolvable:$true] %s37_s28  ;;  %s23_s8 = int_to_ptr.hbm [resolvable:$true] %s22_s8 }
   0x6   :  { %s663_s9 = smov 128   ;;  %s664_s10 = smov 8  }
   0x7   :  { %43 = dma.hbm_to_vmem [thread:$0]  %s36_s26, 256, %s38_s28, [#allocation8], %s663_s9, %s663_s9, %s664_s10  }
   0x8   :  { %s665_s11 = smov [#allocation4]   ;;  %s48_s15 = sshll.u32 %s915_s2, 4  ;;  %s49_s15 = int_to_ptr.hbm [resolvable:$true] %s48_s15 }
   0x9   :  { %s24_s12 = sshll.u32 %s665_s11, 4  ;;  %s63_s17 = sshll.u32 %s917_s4, 4  ;;  %s25_s12 = int_to_ptr.vmem [resolvable:$true] %s24_s12  ;;  %s64_s17 = int_to_ptr.hbm [resolvable:$true] %s63_s17 }
   0xa   :  { %30 = dma.hbm_to_vmem [thread:$0]  %s23_s8, 1024, %s25_s12, [#allocation5], %s663_s9, %s663_s9, %s664_s10  }
   0xb   :  { %s666_s18 = smov [#allocation9]   ;;  %s667_s0 = smov [#allocation10]  }
   0xc   :  { %s50_s19 = sshll.u32 %s666_s18, 4  ;;  %s65_s20 = sshll.u32 %s667_s0, 4  ;;  %s51_s19 = int_to_ptr.vmem [resolvable:$true] %s50_s19  ;;  %s66_s20 = int_to_ptr.vmem [resolvable:$true] %s65_s20 }
   0xd   :  { %56 = dma.hbm_to_vmem [thread:$0]  %s49_s15, 2048, %s51_s19, [#allocation8], %s663_s9, %s663_s9, %s664_s10  }
   0xe   :  { %71 = dma.hbm_to_vmem [thread:$0]  %s64_s17, 2048, %s66_s20, [#allocation11], %s663_s9, %s663_s9, %s664_s10  }
   0xf   :  { %652 = dma.done.wait [#allocation5], 1024  }
  0x10   :  { %653 = vsyncadd [#allocation5], 4294966272 }
  0x11   :  { %654 = dma.done.wait [#allocation8], 2304  }
  0x12   :  { %655 = vsyncadd [#allocation8], 4294964992 }
  0x13   :  { %656 = dma.done.wait [#allocation11], 2048  }
  0x14   :  { %657 = vsyncadd [#allocation11], 4294965248  ;;  %v723_v0 = vld [vmem:[#allocation9 + $0x78] sm:$0xff]  ;;  %v725_v1 = vld [vmem:[#allocation9 + $0x70] sm:$0xff]  ;;  %vm109_vm0 = vcmask 130048   ;;  %v668_v19 = vmov 0.0  }
  0x15   :  { %201 = vmatpush.msra.mxu1 %v723_v0  ;;  %225 = vmatpush.msra.mxu2 %v723_v0  ;;  %v729_v2 = vld [vmem:[#allocation9 + $0x68] sm:$0xff]  ;;  %v734_v3 = vld [vmem:[#allocation9 + $0x60] sm:$0xff]  ;;  %v104_v4 = vld [vmem:[#allocation7 + $0x8] sm:$0xff]  ;;  %s456_s24 = sshll.u32 %s920_s7, 4  ;;  %s670_s27 = smov [#allocation12]   ;;  %s457_s24 = int_to_ptr.hbm [resolvable:$true] %s456_s24 }
  0x16   :  { %249 = vmatpush.msra.mxu3 %v723_v0  ;;  %148 = vmatpush.msra.mxu0 %v104_v4  ;;  %v103_v5 = vld [vmem:[#allocation7] sm:$0xff]  ;;  %v738_v7 = vld [vmem:[#allocation9 + $0x58] sm:$0xff]  ;;  %v749_v9 = vld [vmem:[#allocation9 + $0x48] sm:$0xff]  ;;  %s443_s28 = sshll.u32 %s670_s27, 4  ;;  %s445_s8 = sshll.u32 %s919_s6, 4  ;;  %s444_s28 = int_to_ptr.vmem [resolvable:$true] %s443_s28  ;;  %s446_s8 = int_to_ptr.hbm [resolvable:$true] %s445_s8 }
  0x17   :  { %202 = vmatpush.msra.mxu1 %v725_v1  ;;  %226 = vmatpush.msra.mxu2 %v725_v1  ;;  %v95_v6 = vld [vmem:[#allocation4] sm:$0xff]  ;;  %v755_v10 = vld [vmem:[#allocation9 + $0x40] sm:$0xff]  ;;  %v761_v11 = vld [vmem:[#allocation9 + $0x38] sm:$0xff] }
  0x18   :  { %250 = vmatpush.msra.mxu3 %v725_v1  ;;  %149 = vmatpush.msra.mxu0 %v103_v5  ;;  %v743_v8 = vld [vmem:[#allocation9 + $0x50] sm:$0xff]  ;;  %v773_v13 = vld [vmem:[#allocation9 + $0x28] sm:$0xff]  ;;  %v779_v14 = vld [vmem:[#allocation9 + $0x20] sm:$0xff] }
  0x19   :  { %203 = vmatpush.msra.mxu1 %v729_v2  ;;  %227 = vmatpush.msra.mxu2 %v729_v2  ;;  %v767_v12 = vld [vmem:[#allocation9 + $0x30] sm:$0xff]  ;;  %v785_v15 = vld [vmem:[#allocation9 + $0x18] sm:$0xff]  ;;  %v797_v17 = vld [vmem:[#allocation9 + $0x8] sm:$0xff] }
  0x1a   :  { %251 = vmatpush.msra.mxu3 %v729_v2  ;;  %473 = vmatmul.msk.f32.vlgmr.msra.gmra.mxu0 %vm109_vm0, %v95_v6  ;;  %v791_v16 = vld [vmem:[#allocation9 + $0x10] sm:$0xff]  ;;  %v803_v18 = vld [vmem:[#allocation9] sm:$0xff]  ;;  %v96_v20 = vld [vmem:[#allocation4 + $0x8] sm:$0xff] }
  0x1b   :  { %204 = vmatpush.msra.mxu1 %v734_v3  ;;  %228 = vmatpush.msra.mxu2 %v734_v3  ;;  %v888_v21 = vld [vmem:[%s916_s3] ss:$0 sm:$0xff]  ;;  %v97_v27 = vld [vmem:[#allocation4 + $0x10] sm:$0xff]  ;;  %v98_v33 = vld [vmem:[#allocation4 + $0x18] sm:$0xff]  ;;  %s669_s3 = smov [#allocation13]  }
  0x1c   :  { %252 = vmatpush.msra.mxu3 %v734_v3  ;;  %345 = vmatpush.msrb.mxu0 %v723_v0  ;;  %v99_v39 = vld [vmem:[#allocation4 + $0x20] sm:$0xff]  ;;  %v100_v45 = vld [vmem:[#allocation4 + $0x28] sm:$0xff]  ;;  %v101_v46 = vld [vmem:[#allocation4 + $0x30] sm:$0xff]  ;;  %s454_s21 = sshll.u32 %s669_s3, 4  ;;  %s455_s21 = int_to_ptr.vmem [resolvable:$true] %s454_s21 }
  0x1d   :  { %205 = vmatpush.msra.mxu1 %v738_v7  ;;  %229 = vmatpush.msra.mxu2 %v738_v7  ;;  %v102_v52 = vld [vmem:[#allocation4 + $0x38] sm:$0xff]  ;;  %v412_v58 = vld [vmem:[#allocation10 + $0x78] sm:$0xff]  ;;  %v411_v59 = vld [vmem:[#allocation10 + $0x70] sm:$0xff] }
  0x1e   :  { %253 = vmatpush.msra.mxu3 %v738_v7  ;;  %346 = vmatpush.msrb.mxu0 %v725_v1  ;;  %v410_v61 = vld [vmem:[#allocation10 + $0x68] sm:$0xff]  ;;  %v409_v62 = vld [vmem:[#allocation10 + $0x60] sm:$0xff]  ;;  %v408_v63 = vld [vmem:[#allocation10 + $0x58] sm:$0xff] }
  0x1f   :  { %206 = vmatpush.msra.mxu1 %v743_v8  ;;  %230 = vmatpush.msra.mxu2 %v743_v8  ;;  %v404_v4 = vld [vmem:[#allocation10 + $0x38] sm:$0xff]  ;;  %v403_v5 = vld [vmem:[#allocation10 + $0x30] sm:$0xff]  ;;  %v402_v6 = vld [vmem:[#allocation10 + $0x28] sm:$0xff] }
  0x20   :  { %254 = vmatpush.msra.mxu3 %v743_v8  ;;  %347 = vmatpush.msrb.mxu0 %v729_v2 }
  0x21   :  { %207 = vmatpush.msra.mxu1 %v749_v9  ;;  %231 = vmatpush.msra.mxu2 %v749_v9 }
  0x22   :  { %255 = vmatpush.msra.mxu3 %v749_v9  ;;  %348 = vmatpush.msrb.mxu0 %v734_v3 }
  0x23   :  { %208 = vmatpush.msra.mxu1 %v755_v10  ;;  %232 = vmatpush.msra.mxu2 %v755_v10 }
  0x24   :  { %256 = vmatpush.msra.mxu3 %v755_v10  ;;  %349 = vmatpush.msrb.mxu0 %v738_v7 }
  0x25   :  { %209 = vmatpush.msra.mxu1 %v761_v11  ;;  %233 = vmatpush.msra.mxu2 %v761_v11 }
  0x26   :  { %257 = vmatpush.msra.mxu3 %v761_v11  ;;  %350 = vmatpush.msrb.mxu0 %v743_v8 }
  0x27   :  { %210 = vmatpush.msra.mxu1 %v767_v12  ;;  %234 = vmatpush.msra.mxu2 %v767_v12 }
  0x28   :  { %258 = vmatpush.msra.mxu3 %v767_v12  ;;  %351 = vmatpush.msrb.mxu0 %v749_v9 }
  0x29   :  { %211 = vmatpush.msra.mxu1 %v773_v13  ;;  %235 = vmatpush.msra.mxu2 %v773_v13 }
  0x2a   :  { %259 = vmatpush.msra.mxu3 %v773_v13  ;;  %352 = vmatpush.msrb.mxu0 %v755_v10 }
  0x2b   :  { %212 = vmatpush.msra.mxu1 %v779_v14  ;;  %236 = vmatpush.msra.mxu2 %v779_v14 }
  0x2c   :  { %260 = vmatpush.msra.mxu3 %v779_v14  ;;  %353 = vmatpush.msrb.mxu0 %v761_v11 }
  0x2d   :  { %213 = vmatpush.msra.mxu1 %v785_v15  ;;  %237 = vmatpush.msra.mxu2 %v785_v15 }
  0x2e   :  { %261 = vmatpush.msra.mxu3 %v785_v15  ;;  %354 = vmatpush.msrb.mxu0 %v767_v12 }
  0x2f   :  { %214 = vmatpush.msra.mxu1 %v791_v16  ;;  %238 = vmatpush.msra.mxu2 %v791_v16 }
  0x30   :  { %262 = vmatpush.msra.mxu3 %v791_v16  ;;  %355 = vmatpush.msrb.mxu0 %v773_v13 }
  0x31   :  { %215 = vmatpush.msra.mxu1 %v797_v17  ;;  %239 = vmatpush.msra.mxu2 %v797_v17 }
  0x32   :  { %263 = vmatpush.msra.mxu3 %v797_v17  ;;  %356 = vmatpush.msrb.mxu0 %v779_v14 }
  0x33   :  { %216 = vmatpush.msra.mxu1 %v803_v18  ;;  %240 = vmatpush.msra.mxu2 %v803_v18 }
  0x34   :  { %217 = vmatmul.f32.vlgmr.msra.gmra.mxu1 %v668_v19  ;;  %264 = vmatpush.msra.mxu3 %v803_v18 }
  0x35   :  { %273 = vmatpush.msrb.mxu1 %v723_v0  ;;  %297 = vmatpush.msrb.mxu2 %v723_v0 }
  0x36   :  { %321 = vmatpush.msrb.mxu3 %v723_v0  ;;  %357 = vmatpush.msrb.mxu0 %v785_v15 }
  0x37   :  { %274 = vmatpush.msrb.mxu1 %v725_v1  ;;  %298 = vmatpush.msrb.mxu2 %v725_v1 }
  0x38   :  { %322 = vmatpush.msrb.mxu3 %v725_v1  ;;  %358 = vmatpush.msrb.mxu0 %v791_v16 }
  0x39   :  { %275 = vmatpush.msrb.mxu1 %v729_v2  ;;  %299 = vmatpush.msrb.mxu2 %v729_v2 }
  0x3a   :  { %323 = vmatpush.msrb.mxu3 %v729_v2  ;;  %359 = vmatpush.msrb.mxu0 %v797_v17 }
  0x3b   :  { %276 = vmatpush.msrb.mxu1 %v734_v3  ;;  %300 = vmatpush.msrb.mxu2 %v734_v3 }
  0x3c   :  { %324 = vmatpush.msrb.mxu3 %v734_v3  ;;  %360 = vmatpush.msrb.mxu0 %v803_v18 }
  0x3d   :  { %277 = vmatpush.msrb.mxu1 %v738_v7  ;;  %301 = vmatpush.msrb.mxu2 %v738_v7 }
  0x3e   :  { %325 = vmatpush.msrb.mxu3 %v738_v7  ;;  %474 = vmatmul.msk.f32.gmra.mxu0 %vm109_vm0, %v96_v20  ;;  %v491_v20 = vld [vmem:[%s918_s5] ss:$0 sm:$0xff] }
  0x3f   :  { %278 = vmatpush.msrb.mxu1 %v743_v8  ;;  %302 = vmatpush.msrb.mxu2 %v743_v8 }
  0x40   :  { %326 = vmatpush.msrb.mxu3 %v743_v8 }
  0x41   :  { %279 = vmatpush.msrb.mxu1 %v749_v9  ;;  %303 = vmatpush.msrb.mxu2 %v749_v9 }
  0x42   :  { %327 = vmatpush.msrb.mxu3 %v749_v9 }
  0x43   :  { %280 = vmatpush.msrb.mxu1 %v755_v10  ;;  %304 = vmatpush.msrb.mxu2 %v755_v10 }
  0x44   :  { %328 = vmatpush.msrb.mxu3 %v755_v10 }
  0x45   :  { %281 = vmatpush.msrb.mxu1 %v761_v11  ;;  %305 = vmatpush.msrb.mxu2 %v761_v11 }
  0x46   :  { %329 = vmatpush.msrb.mxu3 %v761_v11  ;;  %475 = vmatmul.msk.f32.gmra.mxu0 %vm109_vm0, %v97_v27 }
  0x47   :  { %282 = vmatpush.msrb.mxu1 %v767_v12  ;;  %306 = vmatpush.msrb.mxu2 %v767_v12 }
  0x48   :  { %330 = vmatpush.msrb.mxu3 %v767_v12 }
  0x49   :  { %283 = vmatpush.msrb.mxu1 %v773_v13  ;;  %307 = vmatpush.msrb.mxu2 %v773_v13 }
  0x4a   :  { %331 = vmatpush.msrb.mxu3 %v773_v13 }
  0x4b   :  { %284 = vmatpush.msrb.mxu1 %v779_v14  ;;  %308 = vmatpush.msrb.mxu2 %v779_v14 }
  0x4c   :  { %332 = vmatpush.msrb.mxu3 %v779_v14 }
  0x4d   :  { %285 = vmatpush.msrb.mxu1 %v785_v15  ;;  %309 = vmatpush.msrb.mxu2 %v785_v15 }
  0x4e   :  { %333 = vmatpush.msrb.mxu3 %v785_v15  ;;  %476 = vmatmul.msk.f32.gmra.mxu0 %vm109_vm0, %v98_v33 }
  0x4f   :  { %286 = vmatpush.msrb.mxu1 %v791_v16  ;;  %310 = vmatpush.msrb.mxu2 %v791_v16 }
  0x50   :  { %334 = vmatpush.msrb.mxu3 %v791_v16 }
  0x51   :  { %287 = vmatpush.msrb.mxu1 %v797_v17  ;;  %311 = vmatpush.msrb.mxu2 %v797_v17 }
  0x52   :  { %335 = vmatpush.msrb.mxu3 %v797_v17 }
  0x53   :  { %288 = vmatpush.msrb.mxu1 %v803_v18  ;;  %312 = vmatpush.msrb.mxu2 %v803_v18 }
  0x54   :  { %336 = vmatpush.msrb.mxu3 %v803_v18 }
  0x55   :  { %369 = vmatpush.msra.mxu1 %v723_v0  ;;  %v407_v0 = vld [vmem:[#allocation10 + $0x50] sm:$0xff] }
  0x56   :  { %477 = vmatmul.msk.f32.gmra.mxu0 %vm109_vm0, %v99_v39 }
  0x57   :  { %370 = vmatpush.msra.mxu1 %v725_v1  ;;  %v406_v1 = vld [vmem:[#allocation10 + $0x48] sm:$0xff] }
  0x59   :  { %371 = vmatpush.msra.mxu1 %v729_v2 }
  0x5b   :  { %372 = vmatpush.msra.mxu1 %v734_v3  ;;  %v405_v3 = vld [vmem:[#allocation10 + $0x40] sm:$0xff] }
  0x5d   :  { %373 = vmatpush.msra.mxu1 %v738_v7 }
  0x5e   :  { %478 = vmatmul.msk.f32.gmra.mxu0 %vm109_vm0, %v100_v45 }
  0x5f   :  { %374 = vmatpush.msra.mxu1 %v743_v8 }
  0x61   :  { %375 = vmatpush.msra.mxu1 %v749_v9 }
  0x63   :  { %376 = vmatpush.msra.mxu1 %v755_v10 }
  0x65   :  { %377 = vmatpush.msra.mxu1 %v761_v11  ;;  %v401_v11 = vld [vmem:[#allocation10 + $0x20] sm:$0xff] }
  0x66   :  { %479 = vmatmul.msk.f32.gmra.mxu0 %vm109_vm0, %v101_v46 }
  0x67   :  { %378 = vmatpush.msra.mxu1 %v767_v12  ;;  %v400_v12 = vld [vmem:[#allocation10 + $0x18] sm:$0xff] }
  0x69   :  { %379 = vmatpush.msra.mxu1 %v773_v13  ;;  %v399_v13 = vld [vmem:[#allocation10 + $0x10] sm:$0xff] }
  0x6b   :  { %380 = vmatpush.msra.mxu1 %v779_v14  ;;  %v398_v14 = vld [vmem:[#allocation10 + $0x8] sm:$0xff] }
  0x6d   :  { %381 = vmatpush.msra.mxu1 %v785_v15  ;;  %v397_v15 = vld [vmem:[#allocation10] sm:$0xff] }
  0x6e   :  { %480 = vmatmul.msk.f32.gmra.mxu0 %vm109_vm0, %v102_v52 }
  0x6f   :  { %382 = vmatpush.msra.mxu1 %v791_v16 }
  0x71   :  { %383 = vmatpush.msra.mxu1 %v797_v17 }
  0x73   :  { %384 = vmatpush.msra.mxu1 %v803_v18 }
  0x97   :  { %v151_v22 = vpop.f32.mrf.mxu0 }
  0x98   :  { %v152_v23 = vadd.f32 %v888_v21, %v151_v22 }
  0xb1   :  { %v218_v24 = vpop.f32.mrf.mxu1 }
  0xb2   :  { %v221_v25 = vadd.f32 %v218_v24, %v152_v23 }
  0xb4   :  { %492 = vtanh.f32 %v221_v25 }
  0xba   :  { %v493_v26 = vpop.eup %492 }
  0xbb   :  { %241 = vmatmul.f32.vlgmr.msra.gmra.mxu2 %v493_v26  ;;  %v154_v28 = vpop.f32.mrf.mxu0 }
  0xbc   :  { %v155_v29 = vadd.f32 %v888_v21, %v154_v28  ;;  %417 = vmatpush.msra.mxu2 %v412_v58 }
  0xbe   :  { %418 = vmatpush.msra.mxu2 %v411_v59 }
  0xc0   :  { %419 = vmatpush.msra.mxu2 %v410_v61 }
  0xc2   :  { %420 = vmatpush.msra.mxu2 %v409_v62 }
  0xc3   :  { %v157_v34 = vpop.f32.mrf.mxu0 }
  0xc4   :  { %v158_v35 = vadd.f32 %v888_v21, %v157_v34  ;;  %421 = vmatpush.msra.mxu2 %v408_v63 }
  0xc6   :  { %422 = vmatpush.msra.mxu2 %v407_v0 }
  0xc8   :  { %423 = vmatpush.msra.mxu2 %v406_v1 }
  0xca   :  { %424 = vmatpush.msra.mxu2 %v405_v3 }
  0xcb   :  { %v160_v40 = vpop.f32.mrf.mxu0 }
  0xcc   :  { %v161_v41 = vadd.f32 %v888_v21, %v160_v40  ;;  %425 = vmatpush.msra.mxu2 %v404_v4 }
  0xce   :  { %426 = vmatpush.msra.mxu2 %v403_v5 }
  0xd0   :  { %427 = vmatpush.msra.mxu2 %v402_v6 }
  0xd2   :  { %428 = vmatpush.msra.mxu2 %v401_v11 }
  0xd3   :  { %v163_v47 = vpop.f32.mrf.mxu0 }
  0xd4   :  { %v164_v48 = vadd.f32 %v888_v21, %v163_v47  ;;  %429 = vmatpush.msra.mxu2 %v400_v12 }
  0xd6   :  { %430 = vmatpush.msra.mxu2 %v399_v13 }
  0xd8   :  { %431 = vmatpush.msra.mxu2 %v398_v14 }
  0xda   :  { %432 = vmatpush.msra.mxu2 %v397_v15 }
  0xdb   :  { %v166_v53 = vpop.f32.mrf.mxu0 }
  0xdc   :  { %v167_v54 = vadd.f32 %v888_v21, %v166_v53 }
  0xe3   :  { %v169_v60 = vpop.f32.mrf.mxu0 }
  0xe4   :  { %v170_v7 = vadd.f32 %v888_v21, %v169_v60 }
  0xeb   :  { %v172_v2 = vpop.f32.mrf.mxu0 }
  0xec   :  { %v173_v16 = vadd.f32 %v888_v21, %v172_v2 }
 0x13e   :  { %v242_v30 = vpop.f32.mrf.mxu2 }
 0x13f   :  { %v245_v31 = vadd.f32 %v242_v30, %v155_v29 }
 0x141   :  { %494 = vtanh.f32 %v245_v31 }
 0x147   :  { %v495_v32 = vpop.eup %494 }
 0x148   :  { %265 = vmatmul.f32.vlgmr.msra.gmra.mxu3 %v495_v32 }
 0x1cb   :  { %v266_v36 = vpop.f32.mrf.mxu3 }
 0x1cc   :  { %v269_v37 = vadd.f32 %v266_v36, %v158_v35 }
 0x1ce   :  { %496 = vtanh.f32 %v269_v37 }
 0x1d4   :  { %v497_v38 = vpop.eup %496 }
 0x1d5   :  { %289 = vmatmul.f32.vlgmr.msrb.gmra.mxu1 %v497_v38 }
 0x252   :  { %v290_v42 = vpop.f32.mrf.mxu1 }
 0x253   :  { %v293_v43 = vadd.f32 %v290_v42, %v161_v41 }
 0x255   :  { %498 = vtanh.f32 %v293_v43 }
 0x25b   :  { %v499_v44 = vpop.eup %498 }
 0x25c   :  { %313 = vmatmul.f32.vlgmr.msrb.gmra.mxu2 %v499_v44 }
 0x2df   :  { %v314_v49 = vpop.f32.mrf.mxu2 }
 0x2e0   :  { %v317_v50 = vadd.f32 %v314_v49, %v164_v48 }
 0x2e2   :  { %500 = vtanh.f32 %v317_v50 }
 0x2e8   :  { %v501_v51 = vpop.eup %500 }
 0x2e9   :  { %337 = vmatmul.f32.vlgmr.msrb.gmra.mxu3 %v501_v51 }
 0x36c   :  { %v338_v55 = vpop.f32.mrf.mxu3 }
 0x36d   :  { %v341_v56 = vadd.f32 %v338_v55, %v167_v54 }
 0x36f   :  { %502 = vtanh.f32 %v341_v56 }
 0x375   :  { %v503_v57 = vpop.eup %502 }
 0x376   :  { %361 = vmatmul.f32.vlgmr.msrb.gmra.mxu0 %v503_v57 }
 0x3f3   :  { %v362_v8 = vpop.f32.mrf.mxu0 }
 0x3f4   :  { %v365_v9 = vadd.f32 %v362_v8, %v170_v7 }
 0x3f6   :  { %504 = vtanh.f32 %v365_v9 }
 0x3fc   :  { %v505_v10 = vpop.eup %504 }
 0x3fd   :  { %385 = vmatmul.f32.vlgmr.msra.gmra.mxu1 %v505_v10 }
 0x47a   :  { %v386_v17 = vpop.f32.mrf.mxu1 }
 0x47b   :  { %v389_v18 = vadd.f32 %v386_v17, %v173_v16 }
 0x47d   :  { %506 = vtanh.f32 %v389_v18 }
 0x483   :  { %v507_v19 = vpop.eup %506 }
 0x484   :  { %396 = vst [vmem:[#allocation13] sm:$0xff] %v507_v19  ;;  %433 = vmatmul.f32.vlgmr.msra.gmra.mxu2 %v507_v19 }
 0x485   :  { %459 = dma.vmem_to_hbm [thread:$0]  %s455_s21, 128, %s457_s24, [#allocation14]  }
 0x507   :  { %v434_v21 = vpop.f32.mrf.mxu2 }
 0x508   :  { %v435_v22 = vadd.f32 %v491_v20, %v434_v21 }
 0x50a   :  { %437 = vst [vmem:[#allocation12] sm:$0xff] %v435_v22 }
 0x50b   :  { %448 = dma.vmem_to_hbm [thread:$0]  %s444_s28, 128, %s446_s8, [#allocation6]  }
 0x50c   :  { %658 = dma.done.wait [#allocation6], 128  }
 0x50d   :  { %659 = vsyncadd [#allocation6], 4294967168 }
 0x50e   :  { %660 = dma.done.wait [#allocation14], 128  }
 0x50f   :  { %661 = vsyncadd [#allocation14], 4294967168 }
 0x510   :  { %468 = vsyncpa [#allocation5], 1 }
 0x511   :  { %469 = vsyncpa [#allocation8], 1 }
 0x512   :  { %470 = vsyncpa [#allocation11], 1 }
 0x513   :  { %471 = vsyncpa [#allocation6], 1 }
 0x514   :  { %472 = vsyncpa [#allocation14], 1 }

</bundles_post_ra>
